<compile_context>
chip_gen: v5e
topology: v5e:2x2
jax: 0.10.0
libtpu: 0.0.40
codegen_flags: <defaults>
</compile_context>

<pallas_src>
import jax
import jax.numpy as jnp
from jax.experimental import pallas as pl
from jax.experimental.pallas import tpu as pltpu

LAMBDA_UNSUPERVISED = 0.1
LAMBDA_CONSISTENCY = 0.05
LAMBDA_CONTRASTIVE = 0.01  # defined in __init__ but unused in forward (matches PyTorch)

_LANES = 128
_SUBLANES = 8  # f32 sublanes per vreg


def _make_loss_kernel(tile_rows, n_valid, n_batch, needs_mask):
    """Builds the loss kernel for a fixed (static) tiling."""
    inv_n = 1.0 / float(n_valid)
    inv_b = 1.0 / float(n_batch)

    def kernel(fused_ref, vec_ref, mi_ref, out_ref, acc_ref):
        i = pl.program_id(0)

        @pl.when(i == 0)
        def _init():
            acc_ref[...] = jnp.zeros_like(acc_ref)

        # --- BCE-with-logits over this (tile_rows, 128) tile, f32 math ---
        x = fused_ref[0].astype(jnp.float32)   # logits (native dtype on the wire)
        y = fused_ref[1].astype(jnp.float32)   # 0/1 targets
        bce = jnp.maximum(x, 0.0) - x * y + jnp.log1p(jnp.exp(-jnp.abs(x)))

        if needs_mask:
            # Zero the padded tail; the divisor below is the true element count.
            r = jax.lax.broadcasted_iota(jnp.int32, (tile_rows, _LANES), 0)
            c = jax.lax.broadcasted_iota(jnp.int32, (tile_rows, _LANES), 1)
            flat = (i * tile_rows + r) * _LANES + c
            bce = jnp.where(flat < n_valid, bce, 0.0)

        # Per-lane partial sums only (pure VPU adds) per grid step; the single
        # cross-lane reduce is deferred to the finalize step.
        acc_ref[...] += jnp.sum(
            bce.reshape(tile_rows // _SUBLANES, _SUBLANES, _LANES), axis=0)

        @pl.when(i == pl.num_programs(0) - 1)
        def _finalize():
            bce_mean = jnp.sum(acc_ref[...]) * inv_n

            # Per-row ref loads: straight out of VMEM, no sublane extracts.
            sp = vec_ref[0, :]   # score_pred.squeeze()
            sc = vec_ref[1, :]   # score
            mk = vec_ref[2, :]   # score_mask (zero-padded)
            d = sp - sc          # padded entries contribute 0
            mse_mean = jnp.sum(d * d) * inv_b
            mask_mean = jnp.sum(mk) * inv_b

            out_ref[0, 0] = (
                bce_mean
                + mse_mean * mask_mean
                + LAMBDA_CONSISTENCY * mse_mean * (1.0 - mask_mean)
                + LAMBDA_UNSUPERVISED * mi_ref[0, 0]
            )

    return kernel


def enhanced_semi_supervised_loss(model_output, targets, score_mask, *,
                                  max_tile_rows=2048):
    """Mirrors EnhancedSemiSupervisedLoss.forward (returns the total loss scalar)."""
    _output, criterion_pred, score_pred, mi_loss = model_output
    _image, _text_ids, _text_mask, score, criteria, _extra = targets

    B = score.shape[0]
    n = criterion_pred.size                       # true element count B*C
    dtype = criterion_pred.dtype                  # native wire dtype (bf16 stays bf16)
    base = max(_SUBLANES, 32 // dtype.itemsize)   # sublane pack granularity (8 f32 / 16 bf16)

    # ---- fused, lane/sublane-dense logits operand: (2, rows_total, 128) ----
    rows_needed = -(-n // _LANES)
    tile_rows = min(int(max_tile_rows), ((rows_needed + base - 1) // base) * base)
    tile_rows = ((tile_rows + base - 1) // base) * base
    num_tiles = -(-rows_needed // tile_rows)
    rows_total = num_tiles * tile_rows
    pad = rows_total * _LANES - n

    cp_flat = jnp.reshape(criterion_pred, (-1,))
    cr_flat = jnp.reshape(criteria, (-1,)).astype(dtype)   # 0/1 labels: exact cast
    if pad:
        cp_flat = jnp.pad(cp_flat, (0, pad))
        cr_flat = jnp.pad(cr_flat, (0, pad))
    fused = jnp.stack([cp_flat, cr_flat], axis=0).reshape(2, rows_total, _LANES)

    # ---- stacked (3, B_pad) vector operand: score_pred / score / mask ----
    b_pad = ((B + _LANES - 1) // _LANES) * _LANES
    vec = jnp.stack(
        [
            jnp.reshape(jnp.squeeze(score_pred), (B,)).astype(jnp.float32),
            jnp.reshape(score, (B,)).astype(jnp.float32),
            jnp.reshape(score_mask, (B,)).astype(jnp.float32),
        ],
        axis=0,
    )
    if b_pad != B:
        vec = jnp.pad(vec, ((0, 0), (0, b_pad - B)))  # zero pad: d=0, mask=0 -> sums unchanged

    mi = jnp.reshape(mi_loss, (1, 1)).astype(jnp.float32)  # SMEM scalar operand

    kernel = _make_loss_kernel(tile_rows, n, B, pad > 0)

    cost = pl.CostEstimate(
        flops=8 * n + 8 * B,
        transcendentals=2 * n,
        bytes_accessed=int(fused.size * fused.dtype.itemsize + vec.size * 4 + 4 + 4),
    )

    # TODO(synk): for very large B*C on v7x, add a leading size-2 "parallel" grid
    # axis emitting per-TensorCore partial sums so both cores share the reduction.
    out = pl.pallas_call(
        kernel,
        out_shape=jax.ShapeDtypeStruct((1, 1), jnp.float32),
        grid_spec=pltpu.PrefetchScalarGridSpec(
            num_scalar_prefetch=0,
            grid=(num_tiles,),
            in_specs=[
                # fused logits/targets, tiled over rows, double-buffered by Pallas
                pl.BlockSpec((2, tile_rows, _LANES), lambda i: (0, i, 0)),
                # small stacked-vector operand, resident across the whole grid
                pl.BlockSpec((3, b_pad), lambda i: (0, 0)),
                # mi_loss scalar in SMEM (scalar path)
                pl.BlockSpec(memory_space=pltpu.MemorySpace.SMEM),
            ],
            out_specs=pl.BlockSpec(memory_space=pltpu.MemorySpace.SMEM),
            scratch_shapes=[pltpu.VMEM((_SUBLANES, _LANES), jnp.float32)],
        ),
        compiler_params=pltpu.CompilerParams(
            dimension_semantics=("arbitrary",),
        ),
        cost_estimate=cost,
    )(fused, vec, mi)

    return out[0, 0]


def _reference_loss(model_output, targets, score_mask):
    _output, criterion_pred, score_pred, mi_loss = model_output
    _image, _text_ids, _text_mask, score, criteria, _ = targets
    x = criterion_pred.astype(jnp.float32)
    y = criteria.astype(jnp.float32)
    bce = jnp.mean(jnp.maximum(x, 0.0) - x * y + jnp.log1p(jnp.exp(-jnp.abs(x))))
    mse = jnp.mean((jnp.squeeze(score_pred) - score) ** 2)
    score_loss = mse * score_mask.astype(jnp.float32)
    consistency_loss = mse * (1.0 - score_mask.astype(jnp.float32))
    supervised = bce + jnp.mean(score_loss)
    return (supervised
            + LAMBDA_UNSUPERVISED * mi_loss
            + LAMBDA_CONSISTENCY * jnp.mean(consistency_loss))


if __name__ == "__main__":
    key = jax.random.PRNGKey(0)

    def build_inputs(k, B, C, H=16, W=16, S=8, hidden=32):
        kc, ks, ksc, kcr, km, kmi, ki, kt = jax.random.split(k, 8)
        output = jax.random.normal(ki, (B, hidden), dtype=jnp.float32)          # unused by loss
        criterion_pred = jax.random.normal(kc, (B, C), dtype=jnp.float32)       # logits
        score_pred = jax.random.normal(ks, (B, 1), dtype=jnp.float32)
        mi_loss = jnp.abs(jax.random.normal(kmi, (), dtype=jnp.float32))
        image = jax.random.normal(kt, (B, 4, H, W), dtype=jnp.float32)          # unused by loss
        text_ids = jax.random.randint(ki, (B, S), 0, 100, dtype=jnp.int32)      # unused by loss
        text_mask = jnp.ones((B, S), dtype=jnp.float32)                         # unused by loss
        score = jax.random.normal(ksc, (B,), dtype=jnp.float32)
        criteria = jax.random.bernoulli(kcr, 0.5, (B, C)).astype(jnp.float32)
        extra = jnp.zeros((B,), dtype=jnp.float32)
        score_mask = jax.random.bernoulli(km, 0.7, (B,)).astype(jnp.float32)
        model_output = (output, criterion_pred, score_pred, mi_loss)
        targets = (image, text_ids, text_mask, score, criteria, extra)
        return model_output, targets, score_mask

    # (B, C, max_tile_rows): single-step padded, 2-step grid no pad, 2-step grid + pad
    configs = [(8, 16, 2048), (16, 128, 8), (16, 120, 8)]
    for idx, (B, C, mtr) in enumerate(configs):
        sub = jax.random.fold_in(key, idx)
        model_output, targets, score_mask = build_inputs(sub, B, C)
        total = enhanced_semi_supervised_loss(model_output, targets, score_mask,
                                              max_tile_rows=mtr)
        total = jax.block_until_ready(total)
        ref = _reference_loss(model_output, targets, score_mask)
        assert jnp.allclose(total, ref, rtol=1e-5, atol=1e-5), (B, C, total, ref)

    print("KERNEL_OK")
</pallas_src>

<mosaic_0001>
module attributes {stable_mosaic.version = 11 : i64} {
  func.func @kernel(%arg0: i32, %arg1: memref<2x8x128xf32, #tpu.memory_space<vmem>>, %arg2: memref<3x128xf32, #tpu.memory_space<vmem>>, %arg3: memref<1x1xf32, #tpu.memory_space<smem>>, %arg4: memref<1x1xf32, #tpu.memory_space<smem>>, %arg5: memref<8x128xf32, #tpu.memory_space<vmem>>) attributes {dimension_semantics = [#tpu.dimension_semantics<arbitrary>], iteration_bounds = array<i64: 1>, scalar_prefetch = 0 : i64, scratch_operands = 1 : i64, tpu.core_type = #tpu.core_type<tc>, window_params = [{transform_indices = @transform_0, window_bounds = array<i64: 2, 8, 128>}, {pipeline_mode = #tpu.pipeline_mode<synchronous>, transform_indices = @transform_1, window_bounds = array<i64: 3, 128>}, {transform_indices = @transform_2, window_bounds = array<i64: 1, 1>}, {transform_indices = @transform_3, window_bounds = array<i64: 1, 1>}]} {
    %c0_i32 = arith.constant 0 : i32
    %0 = arith.cmpi eq, %arg0, %c0_i32 : i32
    %1 = arith.extui %0 : i1 to i32
    %c0_i32_0 = arith.constant 0 : i32
    %2 = arith.cmpi ne, %1, %c0_i32_0 : i32
    scf.if %2 {
      %cst_15 = arith.constant 0.000000e+00 : f32
      %37 = vector.broadcast %cst_15 : f32 to vector<8x128xf32>
      %c0_16 = arith.constant 0 : index
      %c0_17 = arith.constant 0 : index
      %38 = vector.load %arg5[%c0_16, %c0_17] : memref<8x128xf32, #tpu.memory_space<vmem>>, vector<8x128xf32>
      tpu.vector_store %arg5[%c0_16, %c0_17], %37 {strides = array<i32>} : memref<8x128xf32, #tpu.memory_space<vmem>>, vector<8x128xf32>,
    } else {
    }
    %c0 = arith.constant 0 : index
    %c0_1 = arith.constant 0 : index
    %c0_2 = arith.constant 0 : index
    %3 = vector.load %arg1[%c0, %c0_1, %c0_2] : memref<2x8x128xf32, #tpu.memory_space<vmem>>, vector<1x8x128xf32>
    %4 = vector.shape_cast %3 : vector<1x8x128xf32> to vector<8x128xf32>
    %c1 = arith.constant 1 : index
    %c0_3 = arith.constant 0 : index
    %c0_4 = arith.constant 0 : index
    %5 = vector.load %arg1[%c1, %c0_3, %c0_4] : memref<2x8x128xf32, #tpu.memory_space<vmem>>, vector<1x8x128xf32>
    %6 = vector.shape_cast %5 : vector<1x8x128xf32> to vector<8x128xf32>
    %cst = arith.constant 0.000000e+00 : f32
    %7 = vector.broadcast %cst : f32 to vector<8x128xf32>
    %8 = arith.maximumf %4, %7 : vector<8x128xf32>
    %9 = arith.mulf %4, %6 : vector<8x128xf32>
    %10 = arith.subf %8, %9 : vector<8x128xf32>
    %11 = math.absf %4 : vector<8x128xf32>
    %cst_5 = arith.constant 0.000000e+00 : f32
    %12 = vector.broadcast %cst_5 : f32 to vector<8x128xf32>
    %13 = arith.subf %12, %11 : vector<8x128xf32>
    %14 = math.exp %13 : vector<8x128xf32>
    %15 = math.log1p %14 : vector<8x128xf32>
    %16 = arith.addf %10, %15 : vector<8x128xf32>
    %17 = tpu.iota {dimensions = array<i32: 0>} : vector<8x128xi32>
    %18 = tpu.iota {dimensions = array<i32: 1>} : vector<8x128xi32>
    %c8_i32 = arith.constant 8 : i32
    %19 = arith.muli %arg0, %c8_i32 : i32
    %20 = vector.broadcast %19 : i32 to vector<8x128xi32>
    %21 = arith.addi %20, %17 : vector<8x128xi32>
    %c128_i32 = arith.constant 128 : i32
    %22 = vector.broadcast %c128_i32 : i32 to vector<8x128xi32>
    %23 = arith.muli %21, %22 : vector<8x128xi32>
    %24 = arith.addi %23, %18 : vector<8x128xi32>
    %c128_i32_6 = arith.constant 128 : i32
    %25 = vector.broadcast %c128_i32_6 : i32 to vector<8x128xi32>
    %26 = arith.cmpi slt, %24, %25 : vector<8x128xi32>
    %cst_7 = arith.constant 0.000000e+00 : f32
    %27 = vector.broadcast %cst_7 : f32 to vector<8x128xf32>
    %28 = arith.select %26, %16, %27 : vector<8x128xi1>, vector<8x128xf32>
    %c0_8 = arith.constant 0 : index
    %c0_9 = arith.constant 0 : index
    %29 = vector.load %arg5[%c0_8, %c0_9] : memref<8x128xf32, #tpu.memory_space<vmem>>, vector<8x128xf32>
    %30 = vector.shape_cast %28 : vector<8x128xf32> to vector<1x8x128xf32>
    %cst_10 = arith.constant dense<0.000000e+00> : vector<8x128xf32>
    %31 = vector.multi_reduction <add>, %30, %cst_10 [0] : vector<1x8x128xf32> to vector<8x128xf32>
    %32 = arith.addf %29, %31 : vector<8x128xf32>
    %c0_11 = arith.constant 0 : index
    %c0_12 = arith.constant 0 : index
    %33 = vector.load %arg5[%c0_11, %c0_12] : memref<8x128xf32, #tpu.memory_space<vmem>>, vector<8x128xf32>
    tpu.vector_store %arg5[%c0_11, %c0_12], %32 {strides = array<i32>} : memref<8x128xf32, #tpu.memory_space<vmem>>, vector<8x128xf32>,
    %c0_i32_13 = arith.constant 0 : i32
    %34 = arith.cmpi eq, %arg0, %c0_i32_13 : i32
    %35 = arith.extui %34 : i1 to i32
    %c0_i32_14 = arith.constant 0 : i32
    %36 = arith.cmpi ne, %35, %c0_i32_14 : i32
    scf.if %36 {
      %c0_15 = arith.constant 0 : index
      %c0_16 = arith.constant 0 : index
      %37 = vector.load %arg5[%c0_15, %c0_16] : memref<8x128xf32, #tpu.memory_space<vmem>>, vector<8x128xf32>
      %38 = vector.shape_cast %37 : vector<8x128xf32> to vector<1x8x128xf32>
      %cst_17 = arith.constant dense<0.000000e+00> : vector<1xf32>
      %39 = vector.multi_reduction <add>, %38, %cst_17 [1, 2] : vector<1x8x128xf32> to vector<1xf32>
      %40 = vector.shape_cast %39 : vector<1xf32> to vector<1x1x1xf32>
      %41 = vector.extract %40[0, 0, 0] : f32 from vector<1x1x1xf32>
      %cst_18 = arith.constant 7.812500e-03 : f32
      %42 = arith.mulf %41, %cst_18 : f32
      %c0_19 = arith.constant 0 : index
      %c0_20 = arith.constant 0 : index
      %43 = vector.load %arg2[%c0_19, %c0_20] : memref<3x128xf32, #tpu.memory_space<vmem>>, vector<1x128xf32>
      %44 = vector.shape_cast %43 : vector<1x128xf32> to vector<128xf32>
      %c1_21 = arith.constant 1 : index
      %c0_22 = arith.constant 0 : index
      %45 = vector.load %arg2[%c1_21, %c0_22] : memref<3x128xf32, #tpu.memory_space<vmem>>, vector<1x128xf32>
      %46 = vector.shape_cast %45 : vector<1x128xf32> to vector<128xf32>
      %c2 = arith.constant 2 : index
      %c0_23 = arith.constant 0 : index
      %47 = vector.load %arg2[%c2, %c0_23] : memref<3x128xf32, #tpu.memory_space<vmem>>, vector<1x128xf32>
      %48 = vector.shape_cast %47 : vector<1x128xf32> to vector<128xf32>
      %49 = arith.subf %44, %46 : vector<128xf32>
      %50 = arith.mulf %49, %49 : vector<128xf32>
      %51 = vector.shape_cast %50 : vector<128xf32> to vector<1x128xf32>
      %cst_24 = arith.constant dense<0.000000e+00> : vector<1xf32>
      %52 = vector.multi_reduction <add>, %51, %cst_24 [1] : vector<1x128xf32> to vector<1xf32>
      %53 = vector.shape_cast %52 : vector<1xf32> to vector<1x1xf32>
      %54 = vector.extract %53[0, 0] : f32 from vector<1x1xf32>
      %cst_25 = arith.constant 1.250000e-01 : f32
      %55 = arith.mulf %54, %cst_25 : f32
      %56 = vector.shape_cast %48 : vector<128xf32> to vector<1x128xf32>
      %cst_26 = arith.constant dense<0.000000e+00> : vector<1xf32>
      %57 = vector.multi_reduction <add>, %56, %cst_26 [1] : vector<1x128xf32> to vector<1xf32>
      %58 = vector.shape_cast %57 : vector<1xf32> to vector<1x1xf32>
      %59 = vector.extract %58[0, 0] : f32 from vector<1x1xf32>
      %cst_27 = arith.constant 1.250000e-01 : f32
      %60 = arith.mulf %59, %cst_27 : f32
      %61 = arith.mulf %55, %60 : f32
      %62 = arith.addf %42, %61 : f32
      %cst_28 = arith.constant 5.000000e-02 : f32
      %63 = arith.mulf %cst_28, %55 : f32
      %cst_29 = arith.constant 1.000000e+00 : f32
      %64 = arith.subf %cst_29, %60 : f32
      %65 = arith.mulf %63, %64 : f32
      %66 = arith.addf %62, %65 : f32
      %c0_30 = arith.constant 0 : index
      %c0_31 = arith.constant 0 : index
      %67 = memref.load %arg3[%c0_30, %c0_31] : memref<1x1xf32, #tpu.memory_space<smem>>
      %cst_32 = arith.constant 1.000000e-01 : f32
      %68 = arith.mulf %cst_32, %67 : f32
      %69 = arith.addf %66, %68 : f32
      %c0_33 = arith.constant 0 : index
      %c0_34 = arith.constant 0 : index
      %70 = memref.load %arg4[%c0_33, %c0_34] : memref<1x1xf32, #tpu.memory_space<smem>>
      memref.store %69, %arg4[%c0_33, %c0_34] : memref<1x1xf32, #tpu.memory_space<smem>>
    } else {
    }
    return
  }
  func.func @transform_0(%arg0: i32) -> (i32, i32, i32) {
    %c0_i32 = arith.constant 0 : i32
    %c0_i32_0 = arith.constant 0 : i32
    %c0_i32_1 = arith.constant 0 : i32
    return %c0_i32, %arg0, %c0_i32_0 : i32, i32, i32
  }
  func.func @transform_1(%arg0: i32) -> (i32, i32) {
    %c0_i32 = arith.constant 0 : i32
    %c0_i32_0 = arith.constant 0 : i32
    %c0_i32_1 = arith.constant 0 : i32
    return %c0_i32, %c0_i32_0 : i32, i32
  }
  func.func @transform_2(%arg0: i32) -> (i32, i32) {
    %c0_i32 = arith.constant 0 : i32
    %c0_i32_0 = arith.constant 0 : i32
    %c0_i32_1 = arith.constant 0 : i32
    return %c0_i32, %c0_i32_0 : i32, i32
  }
  func.func @transform_3(%arg0: i32) -> (i32, i32) {
    %c0_i32 = arith.constant 0 : i32
    %c0_i32_0 = arith.constant 0 : i32
    %c0_i32_1 = arith.constant 0 : i32
    return %c0_i32, %c0_i32_0 : i32, i32
  }
}

</mosaic_0001>

<bundles_post_ra>
// kernel: tpu_custom_call.1
= control target key start
LH: loop header
LB: loop body
LE: loop exit
PB: predicated region body
PF: predicated region fallthrough
CT: control target
= control target key end

     0   :  { %9 = vsyncpa [#allocation5], 0  ;;  %s264_s0 = inlined_call_operand.hbm [shape: f32[2,8,128], index: 0, kind: input, shape index: {}]   ;;  %s265_s1 = inlined_call_operand.hbm [shape: f32[3,128], index: 1, kind: input, shape index: {}]   ;;  %s266_s2 = inlined_call_operand.<no memory space> [shape: f32[1,1], index: 2, kind: input, shape index: {}]   ;;  %s267_s3 = inlined_call_operand.hbm [shape: f32[1,1], index: 3, kind: output, shape index: {}]  }
   0x1   :  { %10 = vsyncpa [#allocation8], 0 }
   0x2   :  { %11 = vsyncpa [#allocation6], 0  ;;  %s16_s14 = sshll.u32 %s264_s0, 4  ;;  %s225_s15 = smov [#allocation4]   ;;  %s17_s14 = int_to_ptr.hbm [resolvable:$true] %s16_s14 }
   0x3   :  { %s18_s16 = sshll.u32 %s225_s15, 4  ;;  %s30_s19 = sshll.u32 %s265_s1, 4  ;;  %s19_s16 = int_to_ptr.vmem [resolvable:$true] %s18_s16  ;;  %s31_s19 = int_to_ptr.hbm [resolvable:$true] %s30_s19 }
   0x4   :  { %s226_s20 = smov 128   ;;  %s227_s21 = smov 8  }
   0x5   :  { %24 = dma.hbm_to_vmem [thread:$0]  %s17_s14, 256, %s19_s16, [#allocation5], %s226_s20, %s226_s20, %s227_s21  }
   0x6   :  { %s228_s22 = smov [#allocation7]  }
   0x7   :  { %s32_s23 = sshll.u32 %s228_s22, 4  ;;  %s33_s23 = int_to_ptr.vmem [resolvable:$true] %s32_s23 }
   0x8   :  { %35 = dma.hbm_to_vmem [thread:$0]  %s31_s19, 64, %s33_s23, [#allocation8]  }
   0x9   :  { %219 = dma.done.wait [#allocation5], 256  }
   0xa   :  { %220 = vsyncadd [#allocation5], 4294967040 }
   0xb   :  { %221 = dma.done.wait [#allocation8], 64  }
   0xc   :  { %222 = vsyncadd [#allocation8], 4294967232  ;;  %vm105_vm0 = vcmask 1040384   ;;  %v51_v0 = vld [vmem:[#allocation4] sm:$0xff]  ;;  %v102_v1 = vld [vmem:[#allocation7 + $0x2] sm:$0x1]  ;;  %v71_v6 = vlaneseq }
   0xd   :  { %v57_v2 = vand.u32 2147483647, %v51_v0  ;;  %v111_v3 = vsel %vm105_vm0, %v102_v1, 0.0  ;;  %v53_v11 = vld [vmem:[#allocation4 + $0x8] sm:$0xff]  ;;  %v54_v15 = vmax.f32 %v51_v0, 0.0  ;;  %s132_s9 = sshll.u32 %s267_s3, 4  ;;  %s133_s9 = int_to_ptr.hbm [resolvable:$true] %s132_s9 }
   0xe   :  { %112 = vadd.xlane.f32.xlu1 %v111_v3  ;;  %v72_v8 = vshrl.u32 %v71_v6, 7  ;;  %v74_v13 = vand.u32 127, %v71_v6  ;;  %v55_v16 = vmul.f32 %v53_v11, %v51_v0  ;;  %v100_v23 = vld [vmem:[#allocation7] sm:$0x1]  ;;  %v101_v24 = vld [vmem:[#allocation7 + $0x1] sm:$0x1] }
   0xf   :  { %v58_v4 = vsub.f32 0.0, %v57_v2  ;;  %v103_v27 = vsub.f32 %v100_v23, %v101_v24  ;;  %s123_s6 = smul.f32 0.1, %s266_s2  ;;  %s229_s14 = smov [#allocation9]  }
  0x10   :  { %v78_v14 = vmul.u32 128, %v72_v8  ;;  %v56_v21 = vsub.f32 %v54_v15, %v55_v16 }
  0x11   :  { %v59_v5 = vmul.f32 1.442695, %v58_v4  ;;  %v104_v29 = vmul.f32 %v103_v27, %v103_v27 }
  0x12   :  { %v79_v19 = vadd.s32 %v78_v14, %v74_v13 }
  0x13   :  { %155 = vpow2.f32 %v59_v5  ;;  %v106_v30 = vsel %vm105_vm0, %v104_v29, 0.0 }
  0x14   :  { %vm80_vm2 = vcmp.lt.s32.totalorder %v79_v19, 128 }
  0x19   :  { %v156_v7 = vpop.eup %155 }
  0x1a   :  { %v61_v9 = vadd.f32 1.0, %v156_v7  ;;  %v64_v10 = vmul.f32 -0.5, %v156_v7  ;;  %v67_v17 = vand.u32 2147483647, %v156_v7 }
  0x1c   :  { %157 = vlog2.f32 %v61_v9  ;;  %v65_v12 = vadd.f32 1.0, %v64_v10  ;;  %vm68_vm1 = vcmp.lt.f32.partialorder %v67_v17, 0.0004427343 }
  0x1e   :  { %v66_v18 = vmul.f32 %v156_v7, %v65_v12 }
  0x22   :  { %v158_v20 = vpop.eup %157 }
  0x23   :  { %v63_v22 = vmul.f32 0.6931472, %v158_v20 }
  0x25   :  { %v69_v25 = vsel %vm68_vm1, %v66_v18, %v63_v22 }
  0x26   :  { %v70_v26 = vadd.f32 %v69_v25, %v56_v21 }
  0x28   :  { %v81_v28 = vsel %vm80_vm2, %v70_v26, 0.0 }
  0x29   :  { %90 = vadd.xlane.f32.xlu0 %v81_v28 }
  0x31   :  { %107 = vadd.xlane.f32.xlu0 %v106_v30 }
  0x81   :  { %v113_v39 = vpop.xlane.xlu1 %112 }
  0x9c   :  { %v91_v31 = vpop.xlane.xlu0 %90 }
  0x9d   :  { %v92_v32 = vrot.slane %v91_v31, 4 }
  0x9f   :  { %v93_v33 = vadd.f32 %v92_v32, %v91_v31 }
  0xa1   :  { %v94_v34 = vrot.slane %v93_v33, 2 }
  0xa3   :  { %v95_v35 = vadd.f32 %v94_v34, %v93_v33 }
  0xa4   :  { %v108_v37 = vpop.xlane.xlu0 %107 }
  0xa5   :  { %v96_v36 = vrot.slane %v95_v35, 1 }
  0xa7   :  { %v97_v38 = vadd.f32 %v96_v36, %v95_v35 }
  0xa9   :  { %144 = vpush %v97_v38 }
  0xaa   :  { %146 = vpush %v108_v37 }
  0xab   :  { %148 = vpush %v113_v39 }
  0xda   :  { %s145_s0 = spop %144 }
  0xdb   :  { %s99_s1 = smul.f32 0.0078125, %s145_s0  ;;  %s147_s24 = spop %146 }
  0xdc   :  { %s110_s25 = smul.f32 0.125, %s147_s24  ;;  %s149_s26 = spop %148 }
  0xdd   :  { %s115_s27 = smul.f32 0.125, %s149_s26 }
  0xde   :  { %s118_s28 = smul.f32 0.05, %s110_s25 }
  0xdf   :  { %s116_s29 = smul.f32 %s115_s27, %s110_s25  ;;  %s119_s30 = ssub.f32 1.0, %s115_s27 }
  0xe1   :  { %s117_s10 = sadd.f32 %s116_s29, %s99_s1  ;;  %s120_s11 = smul.f32 %s119_s30, %s118_s28 }
  0xe3   :  { %s121_s12 = sadd.f32 %s120_s11, %s117_s10 }
  0xe5   :  { %s124_s13 = sadd.f32 %s123_s6, %s121_s12 }
  0xe7   :  { %126 = sst [smem:[#allocation9]] %s124_s13 }
  0xe8   :  { %135 = dma.smem_to_hbm %s229_s14, 16, %s133_s9, [#allocation6]  }
  0xe9   :  { %223 = dma.done.wait [#allocation6], 16  }
  0xea   :  { %224 = vsyncadd [#allocation6], 4294967280 }
  0xeb   :  { %140 = sfence }
  0xec   :  { %141 = vsyncpa [#allocation5], 1 }
  0xed   :  { %142 = vsyncpa [#allocation8], 1 }
  0xee   :  { %143 = vsyncpa [#allocation6], 1 }

</bundles_post_ra>
